<compile_context>
chip_gen: v5e
topology: v5e:2x2
jax: 0.10.0
libtpu: 0.0.40
codegen_flags: <defaults>
</compile_context>

<pallas_src>
import jax
import jax.numpy as jnp
from jax.experimental import pallas as pl
from jax.experimental.pallas import tpu as pltpu

_LANES = 128
_LANE_WIDTHS = (1024, 512, 256, 128)


def _hard_sigmoid_kernel(x_ref, o_ref):
    x = x_ref[...]
    # relu6(x + 3) / 6  ==  clamp(x + 3, 0, 6) * (1/6)
    y = jnp.clip(x + 3.0, 0.0, 6.0) * (1.0 / 6.0)
    o_ref[...] = y.astype(o_ref.dtype)


def _hs_jnp(x):
    # Same math for the tiny (<128 element) tail / whole-array fallback.
    return (jnp.clip(x + 3.0, 0.0, 6.0) * (1.0 / 6.0)).astype(x.dtype)


def _sublane_multiple(dtype):
    itemsize = jnp.dtype(dtype).itemsize
    if itemsize >= 4:
        return 8
    if itemsize == 2:
        return 16
    return 32


def _round_up(x, m):
    return ((x + m - 1) // m) * m


def _target_block_bytes():
    """Per-generation block size; 4x (in+out, double-buffered) fits the default
    scoped-VMEM budget (16 MiB v5e, 32 MiB v6e/v7x) without vmem_limit_bytes."""
    try:
        kind = jax.devices()[0].device_kind.lower().replace(" ", "")
    except Exception:
        return 4 * 1024 * 1024
    if "v5lite" in kind or "v5e" in kind:
        return 3 * 1024 * 1024
    if "v6" in kind:
        return 6 * 1024 * 1024
    if "7" in kind:  # TPU7x: 3.2 TB/s HBM, 64 MiB physical / 32 MiB scoped VMEM
        return 7 * 1024 * 1024
    return 4 * 1024 * 1024


def _hs_pallas_aligned(flat, block_bytes):
    """Run the kernel on a flat array whose length is a multiple of 128 (>=128)."""
    n = flat.shape[0]
    dtype = flat.dtype
    itemsize = jnp.dtype(dtype).itemsize
    sub = _sublane_multiple(dtype)

    # Widest lane-dense view that divides n -> fewer, larger store descriptors.
    lanes = next(w for w in _LANE_WIDTHS if n % w == 0)
    rows = n // lanes
    x2d = flat.reshape(rows, lanes)

    if rows <= sub:
        # Tiny input: single block equal to the full array.
        block_rows = rows
    else:
        bytes_per_row = lanes * itemsize
        block_rows = max(sub, (block_bytes // bytes_per_row) // sub * sub)
        # Keep >= 4 grid steps when possible (>= 2 steps per TensorCore on v7x)
        # so each core has fetch/compute/writeback overlap.
        quarter_rows = _round_up(pl.cdiv(rows, 4), sub)
        block_rows = min(block_rows, quarter_rows)
        # Best-effort even step count so the two v7x cores stay load-balanced.
        nb = pl.cdiv(rows, block_rows)
        if nb > 1 and nb % 2 == 1:
            cand = _round_up(pl.cdiv(rows, nb + 1), sub)
            if cand >= sub and pl.cdiv(rows, cand) % 2 == 0:
                block_rows = cand

    grid = (pl.cdiv(rows, block_rows),)

    out2d = pl.pallas_call(
        _hard_sigmoid_kernel,
        out_shape=jax.ShapeDtypeStruct((rows, lanes), dtype),
        grid_spec=pltpu.PrefetchScalarGridSpec(
            num_scalar_prefetch=0,
            grid=grid,
            in_specs=[pl.BlockSpec((block_rows, lanes), lambda i: (i, 0))],
            out_specs=pl.BlockSpec((block_rows, lanes), lambda i: (i, 0)),
        ),
        compiler_params=pltpu.CompilerParams(
            dimension_semantics=("parallel",),
        ),
    )(x2d)
    return out2d.reshape(-1)


def hard_sigmoid(x):
    """Elementwise hard-sigmoid (relu6(x+3)/6) via Pallas. Any shape / float dtype."""
    orig_shape = x.shape
    flat = x.reshape(-1)
    n = flat.shape[0]
    if n == 0:
        return x

    block_bytes = _target_block_bytes()
    rem = n % _LANES

    if rem == 0:
        out_flat = _hs_pallas_aligned(flat, block_bytes)
    elif n < _LANES:
        # Whole array is smaller than one lane row: plain jnp (<=127 elements).
        out_flat = _hs_jnp(flat)
    else:
        # Ragged: kernel on the 128-aligned prefix, jnp on the <=127-element tail.
        # (No pad-before / slice-after full-tensor HBM passes.)
        n_main = n - rem
        out_flat = jnp.concatenate(
            [_hs_pallas_aligned(flat[:n_main], block_bytes), _hs_jnp(flat[n_main:])]
        )

    return out_flat.reshape(orig_shape)


def _reference(x):
    return jnp.clip(x + 3.0, 0.0, 6.0) / 6.0


if __name__ == "__main__":
    key = jax.random.PRNGKey(0)

    # Main check: NCHW input consistent with a conv feature map (n % 128 == 0).
    x = jax.random.normal(key, (2, 4, 16, 16), dtype=jnp.float32) * 4.0
    out = jax.block_until_ready(hard_sigmoid(x))
    assert out.shape == x.shape and out.dtype == x.dtype
    assert jnp.allclose(out, _reference(x), atol=1e-6), "mismatch vs reference"

    # Ragged-size check: n = 210 -> aligned prefix through the kernel + jnp tail.
    k1, _ = jax.random.split(key)
    x2 = jax.random.normal(k1, (2, 3, 7, 5), dtype=jnp.float32) * 4.0
    out2 = jax.block_until_ready(hard_sigmoid(x2))
    assert jnp.allclose(out2, _reference(x2), atol=1e-6), "mismatch (ragged)"

    # Partial-last-block check: rows = 17 with block_rows = 8 -> masked final tile.
    k2, _ = jax.random.split(k1)
    x3 = jax.random.normal(k2, (2, 4, 16, 17), dtype=jnp.float32) * 4.0
    out3 = jax.block_until_ready(hard_sigmoid(x3))
    assert jnp.allclose(out3, _reference(x3), atol=1e-6), "mismatch (partial block)"

    # Tiny-input check (< 128 elements total).
    k3, _ = jax.random.split(k2)
    x4 = jax.random.normal(k3, (1, 1, 3, 5), dtype=jnp.float32) * 4.0
    out4 = jax.block_until_ready(hard_sigmoid(x4))
    assert jnp.allclose(out4, _reference(x4), atol=1e-6), "mismatch (tiny)"

    print("KERNEL_OK")
</pallas_src>

<mosaic_0001>
module attributes {stable_mosaic.version = 11 : i64} {
  func.func @_hard_sigmoid_kernel(%arg0: i32, %arg1: memref<2x1024xf32, #tpu.memory_space<vmem>>, %arg2: memref<2x1024xf32, #tpu.memory_space<vmem>>) attributes {dimension_semantics = [#tpu.dimension_semantics<parallel>], iteration_bounds = array<i64: 1>, scalar_prefetch = 0 : i64, scratch_operands = 0 : i64, tpu.core_type = #tpu.core_type<tc>, window_params = [{transform_indices = @transform_0, window_bounds = array<i64: 2, 1024>}, {transform_indices = @transform_1, window_bounds = array<i64: 2, 1024>}]} {
    %c0 = arith.constant 0 : index
    %c0_0 = arith.constant 0 : index
    %0 = vector.load %arg1[%c0, %c0_0] : memref<2x1024xf32, #tpu.memory_space<vmem>>, vector<2x1024xf32>
    %cst = arith.constant 3.000000e+00 : f32
    %1 = vector.broadcast %cst : f32 to vector<2x1024xf32>
    %2 = arith.addf %0, %1 : vector<2x1024xf32>
    %cst_1 = arith.constant 0.000000e+00 : f32
    %cst_2 = arith.constant 6.000000e+00 : f32
    %3 = vector.broadcast %cst_1 : f32 to vector<2x1024xf32>
    %4 = arith.maximumf %3, %2 : vector<2x1024xf32>
    %5 = vector.broadcast %cst_2 : f32 to vector<2x1024xf32>
    %6 = arith.minimumf %5, %4 : vector<2x1024xf32>
    %cst_3 = arith.constant 0.166666672 : f32
    %7 = vector.broadcast %cst_3 : f32 to vector<2x1024xf32>
    %8 = arith.mulf %6, %7 : vector<2x1024xf32>
    %c0_4 = arith.constant 0 : index
    %c0_5 = arith.constant 0 : index
    %9 = vector.load %arg2[%c0_4, %c0_5] : memref<2x1024xf32, #tpu.memory_space<vmem>>, vector<2x1024xf32>
    tpu.vector_store %arg2[%c0_4, %c0_5], %8 {strides = array<i32>} : memref<2x1024xf32, #tpu.memory_space<vmem>>, vector<2x1024xf32>,
    return
  }
  func.func @transform_0(%arg0: i32) -> (i32, i32) {
    %c0_i32 = arith.constant 0 : i32
    %c0_i32_0 = arith.constant 0 : i32
    return %arg0, %c0_i32 : i32, i32
  }
  func.func @transform_1(%arg0: i32) -> (i32, i32) {
    %c0_i32 = arith.constant 0 : i32
    %c0_i32_0 = arith.constant 0 : i32
    return %arg0, %c0_i32 : i32, i32
  }
}

</mosaic_0001>

<bundles_post_ra>
// kernel: tpu_custom_call.1
= control target key start
LH: loop header
LB: loop body
LE: loop exit
PB: predicated region body
PF: predicated region fallthrough
CT: control target
= control target key end

     0   :  { %6 = vsyncpa [#allocation3], 0  ;;  %s124_s0 = inlined_call_operand.hbm [shape: f32[2,1024], index: 0, kind: input, shape index: {}]   ;;  %s125_s1 = inlined_call_operand.hbm [shape: f32[2,1024], index: 1, kind: output, shape index: {}]  }
   0x1   :  { %7 = vsyncpa [#allocation4], 0  ;;  %s13_s8 = sshll.u32 %s124_s0, 4  ;;  %s106_s9 = smov [#allocation2]   ;;  %s14_s8 = int_to_ptr.hbm [resolvable:$true] %s13_s8 }
   0x2   :  { %s15_s10 = sshll.u32 %s106_s9, 4  ;;  %s16_s10 = int_to_ptr.vmem [resolvable:$true] %s15_s10 }
   0x3   :  { %18 = dma.hbm_to_vmem [thread:$0]  %s14_s8, 256, %s16_s10, [#allocation3]  }
   0x4   :  { %102 = dma.done.wait [#allocation3], 256  }
   0x5   :  { %103 = vsyncadd [#allocation3], 4294967040  ;;  %v23_v0 = vld [vmem:[#allocation2] sm:$0xff]  ;;  %v24_v1 = vld [vmem:[#allocation2 + $0x8] sm:$0xff]  ;;  %s107_s11 = smov [#allocation5]   ;;  %s42_s0 = sshll.u32 %s125_s1, 4  ;;  %s43_s0 = int_to_ptr.hbm [resolvable:$true] %s42_s0 }
   0x6   :  { %v25_v2 = vadd.f32 3.0, %v23_v0  ;;  %v26_v3 = vadd.f32 3.0, %v24_v1  ;;  %s40_s12 = sshll.u32 %s107_s11, 4  ;;  %s41_s12 = int_to_ptr.vmem [resolvable:$true] %s40_s12 }
   0x8   :  { %v27_v4 = vmax.f32 %v25_v2, 0.0  ;;  %v28_v5 = vmax.f32 %v26_v3, 0.0 }
   0xa   :  { %v29_v6 = vmin.f32 %v27_v4, 6.0  ;;  %v30_v7 = vmin.f32 %v28_v5, 6.0 }
   0xc   :  { %v31_v8 = vmul.f32 0.16666667, %v29_v6  ;;  %v32_v9 = vmul.f32 0.16666667, %v30_v7 }
   0xe   :  { %33 = vst [vmem:[#allocation5] sm:$0xff] %v31_v8 }
   0xf   :  { %34 = vst [vmem:[#allocation5 + $0x8] sm:$0xff] %v32_v9 }
  0x10   :  { %45 = dma.vmem_to_hbm [thread:$0]  %s41_s12, 256, %s43_s0, [#allocation4]  }
  0x11   :  { %104 = dma.done.wait [#allocation4], 256  }
  0x12   :  { %105 = vsyncadd [#allocation4], 4294967040 }
  0x13   :  { %50 = vsyncpa [#allocation3], 1 }
  0x14   :  { %51 = vsyncpa [#allocation4], 1 }

</bundles_post_ra>
